<compile_context>
chip_gen: v7x
topology: tpu7x:2x2x1
jax: 0.10.0
libtpu: 0.0.40
codegen_flags: <defaults>
</compile_context>

<pallas_src>
import functools
import math

import jax
import jax.numpy as jnp
from jax import lax
from jax.experimental import pallas as pl
from jax.experimental.pallas import tpu as pltpu


LS_LOWER = -20.0
LS_UPPER = 2.0
ACTION_SCALE = 2.0
_HALF_LOG_2PI = 0.5 * math.log(2.0 * math.pi)


# ---------------------------------------------------------------------------
# Shared in-kernel math (exact f32, VPU/XLU/EUP only -- no MXU needed at K=3/N=2)
# ---------------------------------------------------------------------------
def _hidden(x, w1, b1):
    """h = GELU(x @ W1 + b1) via unrolled exact-f32 FMAs (K = nstates is tiny)."""
    nstates = w1.shape[0]
    h = b1                                        # (1, H), broadcasts on first add
    for k in range(nstates):                      # nstates == 3: fully unrolled
        h = h + x[:, k:k + 1] * w1[k:k + 1, :]    # (B,1)*(1,H) -> (B,H), exact f32
    # Exact (erf-based) GELU, same as torch.nn.GELU().
    return 0.5 * h * (1.0 + lax.erf(h * (1.0 / math.sqrt(2.0))))


def _heads(h, whT, bh):
    """[mean | log_std_raw] = h @ whT.T + bh via per-column XLU lane reductions."""
    two_a = whT.shape[0]
    cols = [jnp.sum(h * whT[j:j + 1, :], axis=-1, keepdims=True)
            for j in range(two_a)]                # 2A == 2: fully unrolled
    return jnp.concatenate(cols, axis=1) + bh     # (B, 2A)


# ---------------------------------------------------------------------------
# Kernels
# ---------------------------------------------------------------------------
def _policy_fwd_kernel(x_ref, w1_ref, b1_ref, whT_ref, bh_ref, out_ref):
    h = _hidden(x_ref[...], w1_ref[...], b1_ref[...])
    heads = _heads(h, whT_ref[...], bh_ref[...])                   # (B, 2A)
    action_dim = whT_ref.shape[0] // 2
    col = lax.broadcasted_iota(jnp.int32, heads.shape, 1)
    clamped = jnp.clip(heads, LS_LOWER, LS_UPPER)
    out_ref[...] = jnp.where(col < action_dim, heads, clamped).astype(out_ref.dtype)


def _policy_sample_kernel(x_ref, noise_ref, w1_ref, b1_ref, whT_ref, bh_ref,
                          out_ref, *, eps):
    """Fused actor step: forward + rsample + tanh squash + log_prob, one slab out."""
    h = _hidden(x_ref[...], w1_ref[...], b1_ref[...])
    heads = _heads(h, whT_ref[...], bh_ref[...])
    action_dim = whT_ref.shape[0] // 2
    mean = heads[:, :action_dim]
    log_std = jnp.clip(heads[:, action_dim:], LS_LOWER, LS_UPPER)
    std = jnp.exp(log_std)

    noise = noise_ref[...]                       # (B, A) ~ N(0, 1)
    z = mean + std * noise                       # rsample
    t = jnp.tanh(z)
    action = t * ACTION_SCALE
    # Normal(mean, std).log_prob(z), with (z - mean)/std == noise exactly.
    log_p = -0.5 * noise * noise - log_std - _HALF_LOG_2PI
    log_p = log_p - jnp.log(1.0 - t * t + eps)

    out_ref[...] = jnp.concatenate([action, log_p, mean, log_std],
                                   axis=1).astype(out_ref.dtype)


# ---------------------------------------------------------------------------
# Wrappers
# ---------------------------------------------------------------------------
def policy_net_forward(x, params, *, block_b=512):
    """x: (B, nstates) f32; params = (w1, b1, whT, bh).  Returns (mean, log_std)."""
    w1, b1, whT, bh = params
    B = x.shape[0]
    nstates, hidden = w1.shape
    two_a = whT.shape[0]
    action_dim = two_a // 2
    out_shape = jax.ShapeDtypeStruct((B, two_a), jnp.float32)

    if B >= 2 * block_b and B % block_b == 0:
        # Vectorized-env path: parallel grid over the batch (shards across v7x's
        # two TensorCores, keeps x/h VMEM residency bounded for any B).
        out = pl.pallas_call(
            _policy_fwd_kernel,
            out_shape=out_shape,
            grid=(B // block_b,),
            in_specs=[
                pl.BlockSpec((block_b, nstates), lambda i: (i, 0)),
                pl.BlockSpec((nstates, hidden), lambda i: (0, 0)),
                pl.BlockSpec((1, hidden), lambda i: (0, 0)),
                pl.BlockSpec((two_a, hidden), lambda i: (0, 0)),
                pl.BlockSpec((1, two_a), lambda i: (0, 0)),
            ],
            out_specs=pl.BlockSpec((block_b, two_a), lambda i: (i, 0)),
            compiler_params=pltpu.CompilerParams(
                dimension_semantics=("parallel",)),
        )(x, w1, b1, whT, bh)
    else:
        # Small-batch actor step: gridless, everything whole-array in VMEM.
        vmem = pl.BlockSpec(memory_space=pltpu.MemorySpace.VMEM)
        out = pl.pallas_call(
            _policy_fwd_kernel,
            out_shape=out_shape,
            in_specs=[vmem] * 5,
            out_specs=vmem,
        )(x, w1, b1, whT, bh)

    return out[:, :action_dim], out[:, action_dim:]


def policy_net_sample(x, params, key, eps=1e-5):
    """Fused PolicyNet.sample(): returns (action, log_p, mean, log_std)."""
    w1, b1, whT, bh = params
    B = x.shape[0]
    action_dim = whT.shape[0] // 2
    # TODO(synk): move noise generation in-kernel via pltpu.prng_seed /
    # pltpu.prng_random_bits once a uniform->normal transform (Box-Muller needs
    # sin/cos) is confirmed in the Mosaic lowering; here it is a single fused
    # jax.random.normal op feeding one pallas_call.
    noise = jax.random.normal(key, (B, action_dim), jnp.float32)

    vmem = pl.BlockSpec(memory_space=pltpu.MemorySpace.VMEM)
    out = pl.pallas_call(
        functools.partial(_policy_sample_kernel, eps=eps),
        out_shape=jax.ShapeDtypeStruct((B, 4 * action_dim), jnp.float32),
        in_specs=[vmem] * 6,
        out_specs=vmem,
    )(x, noise, w1, b1, whT, bh)

    action = out[:, 0 * action_dim:1 * action_dim]
    log_p = out[:, 1 * action_dim:2 * action_dim]
    mean = out[:, 2 * action_dim:3 * action_dim]
    log_std = out[:, 3 * action_dim:4 * action_dim]
    if action_dim == 1:  # match torch's .squeeze(-1)
        action, log_p, mean, log_std = (a[:, 0] for a in
                                        (action, log_p, mean, log_std))
    return action, log_p, mean, log_std


def init_params(key, nstates=3, action_dim=1, hidden_dim=128):
    """PyTorch-Linear-style init (uniform +/- 1/sqrt(fan_in)).

    Canonical (pre-fused) layout, per perf review:
      w1  : (nstates, hidden)           (so the kernel does x @ w1)
      b1  : (1, hidden)
      whT : (2*action_dim, hidden)      fused [mean; log_std] head, (out, in) layout
      bh  : (1, 2*action_dim)
    """
    ks = jax.random.split(key, 6)

    def uni(k, shape, fan_in):
        bound = 1.0 / math.sqrt(fan_in)
        return jax.random.uniform(k, shape, jnp.float32, -bound, bound)

    w1 = uni(ks[0], (nstates, hidden_dim), nstates)
    b1 = uni(ks[1], (1, hidden_dim), nstates)
    wmT = uni(ks[2], (action_dim, hidden_dim), hidden_dim)
    bm = uni(ks[3], (1, action_dim), hidden_dim)
    wsT = uni(ks[4], (action_dim, hidden_dim), hidden_dim)
    bs = uni(ks[5], (1, action_dim), hidden_dim)
    whT = jnp.concatenate([wmT, wsT], axis=0)   # fused ONCE here, not per call
    bh = jnp.concatenate([bm, bs], axis=1)
    return w1, b1, whT, bh


if __name__ == "__main__":
    key = jax.random.PRNGKey(0)
    k_x, k_p, k_n, k_xl = jax.random.split(key, 4)

    B, nstates, action_dim, hidden_dim = 8, 3, 1, 128
    x = jax.random.normal(k_x, (B, nstates), jnp.float32)
    params = init_params(k_p, nstates, action_dim, hidden_dim)
    w1, b1, whT, bh = params

    # Pure-JAX reference (module semantics).
    def ref_forward(xr):
        h = jax.nn.gelu(jnp.dot(xr, w1, precision=lax.Precision.HIGHEST) + b1,
                        approximate=False)
        heads = jnp.dot(h, whT.T, precision=lax.Precision.HIGHEST) + bh
        m = heads[:, :action_dim]
        ls = jnp.clip(heads[:, action_dim:], LS_LOWER, LS_UPPER)
        return m, ls

    # --- forward, small batch (gridless whole-array path) ---
    mean, log_std = jax.jit(policy_net_forward)(x, params)
    jax.block_until_ready((mean, log_std))
    mean_ref, ls_ref = ref_forward(x)
    assert mean.shape == (B, action_dim) and log_std.shape == (B, action_dim)
    assert jnp.allclose(mean, mean_ref, atol=1e-5, rtol=1e-5)
    assert jnp.allclose(log_std, ls_ref, atol=1e-5, rtol=1e-5)

    # --- forward, vectorized-env batch (parallel-grid path) ---
    BL = 1024
    xl = jax.random.normal(k_xl, (BL, nstates), jnp.float32)
    mean_l, log_std_l = jax.jit(
        functools.partial(policy_net_forward, block_b=512))(xl, params)
    jax.block_until_ready((mean_l, log_std_l))
    mean_lr, ls_lr = ref_forward(xl)
    assert jnp.allclose(mean_l, mean_lr, atol=1e-5, rtol=1e-5)
    assert jnp.allclose(log_std_l, ls_lr, atol=1e-5, rtol=1e-5)

    # --- fused actor step (sample) ---
    action, log_p, mean_s, log_std_s = jax.jit(policy_net_sample)(x, params, k_n)
    jax.block_until_ready((action, log_p, mean_s, log_std_s))
    noise = jax.random.normal(k_n, (B, action_dim), jnp.float32)
    m_r, ls_r = ref_forward(x)
    std_r = jnp.exp(ls_r)
    z_r = m_r + std_r * noise
    t_r = jnp.tanh(z_r)
    act_r = (t_r * ACTION_SCALE)[:, 0]
    lp_r = (-0.5 * noise ** 2 - ls_r - _HALF_LOG_2PI
            - jnp.log(1.0 - t_r ** 2 + 1e-5))[:, 0]
    assert jnp.allclose(action, act_r, atol=1e-5, rtol=1e-5)
    assert jnp.allclose(log_p, lp_r, atol=1e-5, rtol=1e-5)
    assert jnp.allclose(mean_s, m_r[:, 0], atol=1e-5, rtol=1e-5)
    assert jnp.allclose(log_std_s, ls_r[:, 0], atol=1e-5, rtol=1e-5)

    print("KERNEL_OK")
</pallas_src>

<mosaic_0001>
module attributes {stable_mosaic.version = 11 : i64} {
  func.func @_policy_fwd_kernel(%arg0: memref<8x3xf32, #tpu.memory_space<vmem>>, %arg1: memref<3x128xf32, #tpu.memory_space<vmem>>, %arg2: memref<1x128xf32, #tpu.memory_space<vmem>>, %arg3: memref<2x128xf32, #tpu.memory_space<vmem>>, %arg4: memref<1x2xf32, #tpu.memory_space<vmem>>, %arg5: memref<8x2xf32, #tpu.memory_space<vmem>>) attributes {dimension_semantics = [], scalar_prefetch = 0 : i64, scratch_operands = 0 : i64, tpu.core_type = #tpu.core_type<tc>} {
    %c0 = arith.constant 0 : index
    %c0_0 = arith.constant 0 : index
    %0 = vector.load %arg0[%c0, %c0_0] : memref<8x3xf32, #tpu.memory_space<vmem>>, vector<8x3xf32>
    %c0_1 = arith.constant 0 : index
    %c0_2 = arith.constant 0 : index
    %1 = vector.load %arg1[%c0_1, %c0_2] : memref<3x128xf32, #tpu.memory_space<vmem>>, vector<3x128xf32>
    %c0_3 = arith.constant 0 : index
    %c0_4 = arith.constant 0 : index
    %2 = vector.load %arg2[%c0_3, %c0_4] : memref<1x128xf32, #tpu.memory_space<vmem>>, vector<1x128xf32>
    %3 = vector.extract_strided_slice %0 {offsets = [0, 0], sizes = [8, 1], strides = [1, 1]} : vector<8x3xf32> to vector<8x1xf32>
    %4 = vector.extract_strided_slice %1 {offsets = [0, 0], sizes = [1, 128], strides = [1, 1]} : vector<3x128xf32> to vector<1x128xf32>
    %5 = vector.broadcast %3 : vector<8x1xf32> to vector<8x128xf32>
    %6 = vector.broadcast %4 : vector<1x128xf32> to vector<8x128xf32>
    %7 = arith.mulf %5, %6 : vector<8x128xf32>
    %8 = vector.broadcast %2 : vector<1x128xf32> to vector<8x128xf32>
    %9 = arith.addf %8, %7 : vector<8x128xf32>
    %10 = vector.extract_strided_slice %0 {offsets = [0, 1], sizes = [8, 1], strides = [1, 1]} : vector<8x3xf32> to vector<8x1xf32>
    %11 = vector.extract_strided_slice %1 {offsets = [1, 0], sizes = [1, 128], strides = [1, 1]} : vector<3x128xf32> to vector<1x128xf32>
    %12 = vector.broadcast %10 : vector<8x1xf32> to vector<8x128xf32>
    %13 = vector.broadcast %11 : vector<1x128xf32> to vector<8x128xf32>
    %14 = arith.mulf %12, %13 : vector<8x128xf32>
    %15 = arith.addf %9, %14 : vector<8x128xf32>
    %16 = vector.extract_strided_slice %0 {offsets = [0, 2], sizes = [8, 1], strides = [1, 1]} : vector<8x3xf32> to vector<8x1xf32>
    %17 = vector.extract_strided_slice %1 {offsets = [2, 0], sizes = [1, 128], strides = [1, 1]} : vector<3x128xf32> to vector<1x128xf32>
    %18 = vector.broadcast %16 : vector<8x1xf32> to vector<8x128xf32>
    %19 = vector.broadcast %17 : vector<1x128xf32> to vector<8x128xf32>
    %20 = arith.mulf %18, %19 : vector<8x128xf32>
    %21 = arith.addf %15, %20 : vector<8x128xf32>
    %cst = arith.constant 5.000000e-01 : f32
    %22 = vector.broadcast %cst : f32 to vector<8x128xf32>
    %23 = arith.mulf %22, %21 : vector<8x128xf32>
    %cst_5 = arith.constant 0.707106769 : f32
    %24 = vector.broadcast %cst_5 : f32 to vector<8x128xf32>
    %25 = arith.mulf %21, %24 : vector<8x128xf32>
    %26 = math.erf %25 : vector<8x128xf32>
    %cst_6 = arith.constant 1.000000e+00 : f32
    %27 = vector.broadcast %cst_6 : f32 to vector<8x128xf32>
    %28 = arith.addf %27, %26 : vector<8x128xf32>
    %29 = arith.mulf %23, %28 : vector<8x128xf32>
    %c0_7 = arith.constant 0 : index
    %c0_8 = arith.constant 0 : index
    %30 = vector.load %arg3[%c0_7, %c0_8] : memref<2x128xf32, #tpu.memory_space<vmem>>, vector<2x128xf32>
    %c0_9 = arith.constant 0 : index
    %c0_10 = arith.constant 0 : index
    %31 = vector.load %arg4[%c0_9, %c0_10] : memref<1x2xf32, #tpu.memory_space<vmem>>, vector<1x2xf32>
    %32 = vector.extract_strided_slice %30 {offsets = [0, 0], sizes = [1, 128], strides = [1, 1]} : vector<2x128xf32> to vector<1x128xf32>
    %33 = vector.broadcast %32 : vector<1x128xf32> to vector<8x128xf32>
    %34 = arith.mulf %29, %33 : vector<8x128xf32>
    %cst_11 = arith.constant dense<0.000000e+00> : vector<8xf32>
    %35 = vector.multi_reduction <add>, %34, %cst_11 [1] : vector<8x128xf32> to vector<8xf32>
    %36 = vector.shape_cast %35 : vector<8xf32> to vector<8x1xf32>
    %37 = vector.extract_strided_slice %30 {offsets = [1, 0], sizes = [1, 128], strides = [1, 1]} : vector<2x128xf32> to vector<1x128xf32>
    %38 = vector.broadcast %37 : vector<1x128xf32> to vector<8x128xf32>
    %39 = arith.mulf %29, %38 : vector<8x128xf32>
    %cst_12 = arith.constant dense<0.000000e+00> : vector<8xf32>
    %40 = vector.multi_reduction <add>, %39, %cst_12 [1] : vector<8x128xf32> to vector<8xf32>
    %41 = vector.shape_cast %40 : vector<8xf32> to vector<8x1xf32>
    %42 = tpu.concatenate %36, %41 in 1 : vector<8x1xf32>, vector<8x1xf32> -> vector<8x2xf32>
    %43 = vector.broadcast %31 : vector<1x2xf32> to vector<8x2xf32>
    %44 = arith.addf %42, %43 : vector<8x2xf32>
    %45 = tpu.iota {dimensions = array<i32: 1>} : vector<8x2xi32>
    %cst_13 = arith.constant -2.000000e+01 : f32
    %cst_14 = arith.constant 2.000000e+00 : f32
    %46 = vector.broadcast %cst_13 : f32 to vector<8x2xf32>
    %47 = arith.maximumf %46, %44 : vector<8x2xf32>
    %48 = vector.broadcast %cst_14 : f32 to vector<8x2xf32>
    %49 = arith.minimumf %48, %47 : vector<8x2xf32>
    %c1_i32 = arith.constant 1 : i32
    %50 = vector.broadcast %c1_i32 : i32 to vector<8x2xi32>
    %51 = arith.cmpi slt, %45, %50 : vector<8x2xi32>
    %52 = arith.select %51, %44, %49 : vector<8x2xi1>, vector<8x2xf32>
    %c0_15 = arith.constant 0 : index
    %c0_16 = arith.constant 0 : index
    %53 = vector.load %arg5[%c0_15, %c0_16] : memref<8x2xf32, #tpu.memory_space<vmem>>, vector<8x2xf32>
    tpu.vector_store %arg5[%c0_15, %c0_16], %52 {strides = array<i32>} : memref<8x2xf32, #tpu.memory_space<vmem>>, vector<8x2xf32>,
    return
  }
}

</mosaic_0001>

<bundles_post_ra>
// kernel: policy_net_forward.1
= control target key start
LH: loop header
LB: loop body
LE: loop exit
PB: predicated region body
PF: predicated region fallthrough
CT: control target
= control target key end

     0   :  { %v113_v0 = vmov 0   ;;  %v114_v2 = vmov 2   ;;  %v115_v3 = vmov 1   ;;  %v28_v4 = vlaneseq  ;;  %s164_s0 = inlined_call_operand.vmem [shape: f32[8,3], index: 0, kind: input, shape index: {}]   ;;  %s165_s1 = inlined_call_operand.vmem [shape: f32[3,128], index: 1, kind: input, shape index: {}]   ;;  %s166_s2 = inlined_call_operand.vmem [shape: f32[1,128], index: 2, kind: input, shape index: {}]   ;;  %s167_s3 = inlined_call_operand.vmem [shape: f32[2,128], index: 3, kind: input, shape index: {}]   ;;  %s168_s4 = inlined_call_operand.vmem [shape: f32[1,2], index: 4, kind: input, shape index: {}]   ;;  %s169_s5 = inlined_call_operand.vmem [shape: f32[8,2], index: 5, kind: output, shape index: {}]  }
   0x1   :  { %107 = vset.pattern.permute.xlu0 %v113_v0  ;;  %v20_v1 = vld [vmem:[%s164_s0] sm:$0xff]  ;;  %109 = vset.pattern.permute.xlu1 %v114_v2  ;;  %vm81_vm0 = vcmask 7168   ;;  %vm96_vm2 = vcmask 15360  }
   0x2   :  { %25 = vperm.xlu0 %107, %v20_v1   ;;  %51 = vperm.xlu1 %109, %v20_v1   ;;  %v29_v5 = vshrl.u32 %v28_v4, 7  ;;  %v21_v7 = vld [vmem:[%s165_s1] sm:$0x7]  ;;  %v91_v36 = vand.u32 127, %v28_v4 }
   0x3   :  { %v102_v15 = vld [vmem:[%s166_s2] ss:$0 sm:$0xff] }
   0x4   :  { %v30_v6 = vsub.s32 0, %v29_v5  ;;  %v46_v9 = vsub.s32 1, %v29_v5  ;;  %v56_v10 = vsub.s32 2, %v29_v5  ;;  %v65_v24 = vld [vmem:[%s167_s3] sm:$0x3]  ;;  %vm94_vm1 = vcmp.lt.s32.totalorder %v91_v36, 1 }
   0x5   :  { %v103_v33 = vld [vmem:[%s168_s4] ss:$0 sm:$0xff] }
   0x6   :  { %108 = vset.pattern.permute.xlu0 %v115_v3  ;;  %v31_v8 = vrot.slane %v21_v7, %v30_v6  ;;  %v47_v13 = vrot.slane %v21_v7, %v46_v9  ;;  %v57_v14 = vrot.slane %v21_v7, %v56_v10  ;;  %v77_v28 = vrot.slane %v65_v24, %v46_v9 }
   0x7   :  { %41 = vperm.xlu0 %108, %v20_v1   ;;  %v70_v29 = vrot.slane %v65_v24, %v30_v6 }
   0xb   :  { %110 = vset.pattern.permute.xlu0 %v114_v2 }
  0x81   :  { %v26_v11 = vpop.permute.xlu0 %25  ;;  %v52_v16 = vpop.permute.xlu1 %51 }
  0x82   :  { %v32_v12 = vmul.f32 %v31_v8, %v26_v11  ;;  %v58_v20 = vmul.f32 %v57_v14, %v52_v16 }
  0x84   :  { %v39_v18 = vadd.f32 %v102_v15, %v32_v12 }
  0x86   :  { %v42_v17 = vpop.permute.xlu0 %41 }
  0x87   :  { %v48_v19 = vmul.f32 %v47_v13, %v42_v17 }
  0x89   :  { %v49_v21 = vadd.f32 %v48_v19, %v39_v18 }
  0x8b   :  { %v59_v22 = vadd.f32 %v58_v20, %v49_v21 }
  0x8d   :  { %v61_v23 = vmul.f32 0.70710677, %v59_v22  ;;  %v60_v26 = vmul.f32 0.5, %v59_v22 }
  0x8f   :  { %111 = verf.f32 %v61_v23 }
  0x99   :  { %v112_v25 = vpop.eup %111 }
  0x9a   :  { %v63_v27 = vadd.f32 1.0, %v112_v25 }
  0x9c   :  { %v64_v30 = vmul.f32 %v63_v27, %v60_v26 }
  0x9e   :  { %v78_v31 = vmul.f32 %v77_v28, %v64_v30  ;;  %v71_v32 = vmul.f32 %v70_v29, %v64_v30 }
  0xa0   :  { %79 = vadd.xlane.f32.xlu0 %v78_v31  ;;  %72 = vadd.xlane.f32.xlu1 %v71_v32 }
 0x12d   :  { %v80_v34 = vpop.xlane.xlu0 %79  ;;  %v73_v35 = vpop.xlane.xlu1 %72 }
 0x12e   :  { %v82_v37 = vsel %vm81_vm0, %v73_v35, %v80_v34 }
 0x12f   :  { %v89_v38 = vadd.f32 %v103_v33, %v82_v37 }
 0x131   :  { %v92_v39 = vmax.f32 %v89_v38, -20.0 }
 0x133   :  { %v93_v40 = vmin.f32 %v92_v39, 2.0 }
 0x135   :  { %v95_v41 = vsel %vm94_vm1, %v89_v38, %v93_v40 }
 0x136   :  { %97 = vst.msk [vmem:[%s169_s5] sm:$0xff] %vm96_vm2, %v95_v41 }

</bundles_post_ra>
